<compile_context>
chip_gen: v6e
topology: v6e:2x2x1
jax: 0.10.0
libtpu: 0.0.40
codegen_flags: <defaults>
</compile_context>

<pallas_src>
import functools

import jax
import jax.numpy as jnp
from jax.experimental import pallas as pl
from jax.experimental.pallas import tpu as pltpu


def _round_up(a, b):
    return ((a + b - 1) // b) * b


def _gap_linear_kernel(x_ref, w_ref, b_ref, o_ref, acc_ref, *, inv_hw):
    # x_ref: (TB, C, THW)   w_ref: (C, NCLS)   b_ref: (1, NCLS)
    # o_ref: (TB, NCLS)     acc_ref: (TB, C) f32 scratch
    hw_step = pl.program_id(1)

    @pl.when(hw_step == 0)
    def _():
        acc_ref[...] = jnp.zeros_like(acc_ref)

    # Partial spatial sum for this HW chunk (lane-axis reduce -> XLU; f32 accumulate).
    acc_ref[...] += jnp.sum(x_ref[...], axis=-1, dtype=jnp.float32)

    @pl.when(hw_step == pl.num_programs(1) - 1)
    def _():
        pooled = acc_ref[...] * inv_hw                                    # (TB, C)
        out = jnp.dot(pooled, w_ref[...].astype(jnp.float32),
                      preferred_element_type=jnp.float32)                 # (TB, NCLS)
        o_ref[...] = (out + b_ref[...].astype(jnp.float32)).astype(o_ref.dtype)


def _device_budgets():
    """(target padded bytes per x block, scoped-VMEM limit) per chip generation."""
    try:
        vmem_cap = pltpu.get_tpu_info().vmem_capacity_bytes
    except Exception:                               # unknown backend: v7x-safe defaults
        vmem_cap = 64 * 1024 * 1024
    if vmem_cap >= 100 * 1024 * 1024:               # v5e / v6e: 128 MiB physical VMEM
        return 12 * 1024 * 1024, 64 * 1024 * 1024
    return 6 * 1024 * 1024, 32 * 1024 * 1024        # v7x: 64 MiB physical VMEM


def _pick_tiling(B, C, HW, itemsize, target_block_bytes):
    """Choose (tile_b, tile_hw) using layout-padded VMEM footprints."""
    c_pad = _round_up(C, 8)        # second-to-last dim pads to a sublane multiple
    hw_pad = _round_up(HW, 128)    # last dim pads to a lane multiple

    # ---- batch tile ----
    rows_fit = max(1, target_block_bytes // (c_pad * hw_pad * itemsize))
    if rows_fit >= B:
        if B >= 16 and B % 16 == 0:
            tile_b = B // 2        # >= 2 "parallel" steps -> both v7x TensorCores busy
        else:
            tile_b = B             # single batch tile (HW axis provides pipelining)
    else:
        tb = min(B, max(8, (rows_fit // 8) * 8))
        # Prefer a multiple-of-8 divisor of B so no batch padding (no extra x copy).
        d = (tb // 8) * 8
        while d >= 8 and B % d != 0:
            d -= 8
        tile_b = d if d >= 8 else tb

    n_b_tiles = pl.cdiv(B, tile_b)

    # ---- HW (reduction) tile ----
    tile_hw = HW
    block_bytes = tile_b * c_pad * hw_pad * itemsize
    if HW % 128 == 0 and HW > 128:
        # Split HW when the block overshoots the budget (keeps double-buffering alive,
        # incl. the max(8,...) round-up case) or when the batch grid has a single step
        # (restores pipelining for small batches).
        need_split = (block_bytes > target_block_bytes) or (n_b_tiles == 1)
        if need_split:
            divisors = [d for d in range(128, HW, 128) if HW % d == 0]
            if divisors:
                tile_hw = divisors[0]
                for d in sorted(divisors, reverse=True):
                    if tile_b * c_pad * d * itemsize <= target_block_bytes:
                        tile_hw = d
                        break
    return tile_b, tile_hw


def resnet_classifier_forward(x, weight, bias, *, tile_b=None, tile_hw=None):
    """x: (B, C, H, W) NCHW; weight: (n_class, C) (nn.Linear layout); bias: (n_class,)."""
    B, C, H, W = x.shape
    HW = H * W
    n_class = weight.shape[0]
    assert weight.shape[1] == C, "len_feature must equal channel count"

    # Free view: NCHW -> (B, C, HW). No transpose, no extra HBM traffic.
    x_flat = x.reshape(B, C, HW)

    # Lane-dense classifier params: (C, NCLS) weight, (1, NCLS) bias, NCLS % 128 == 0.
    NCLS = _round_up(n_class, 128)
    w_t = jnp.pad(jnp.transpose(weight), ((0, 0), (0, NCLS - n_class)))
    b_p = jnp.pad(bias.reshape(1, n_class), ((0, 0), (0, NCLS - n_class)))

    target_block_bytes, vmem_limit = _device_budgets()
    auto_b, auto_hw = _pick_tiling(B, C, HW, x_flat.dtype.itemsize, target_block_bytes)
    tile_b = auto_b if tile_b is None else tile_b
    tile_hw = auto_hw if tile_hw is None else tile_hw
    assert HW % tile_hw == 0, "tile_hw must divide H*W"

    n_b_tiles = pl.cdiv(B, tile_b)
    n_hw_tiles = HW // tile_hw

    B_pad = n_b_tiles * tile_b
    if B_pad != B:
        # Only hit when no multiple-of-8 batch tile divides B; padded rows are sliced off.
        x_flat = jnp.pad(x_flat, ((0, B_pad - B), (0, 0), (0, 0)))

    out_dtype = jnp.float32
    cost = pl.CostEstimate(
        flops=B_pad * C * HW + 2 * B_pad * C * NCLS,
        transcendentals=0,
        bytes_accessed=(x_flat.size * x_flat.dtype.itemsize
                        + w_t.size * w_t.dtype.itemsize
                        + b_p.size * b_p.dtype.itemsize
                        + B_pad * NCLS * jnp.dtype(out_dtype).itemsize),
    )

    kernel = functools.partial(_gap_linear_kernel, inv_hw=1.0 / HW)

    out = pl.pallas_call(
        kernel,
        out_shape=jax.ShapeDtypeStruct((B_pad, NCLS), out_dtype),
        grid_spec=pltpu.PrefetchScalarGridSpec(
            num_scalar_prefetch=0,
            grid=(n_b_tiles, n_hw_tiles),            # reduction (HW) axis last
            in_specs=[
                # x: tiled over batch and HW -> auto double-buffered streaming DMA.
                pl.BlockSpec((tile_b, C, tile_hw), lambda i, j: (i, 0, j)),
                # weight / bias: same block every step -> resident in VMEM.
                pl.BlockSpec((C, NCLS), lambda i, j: (0, 0)),
                pl.BlockSpec((1, NCLS), lambda i, j: (0, 0)),
            ],
            # Same output block across the HW axis -> stays resident until the last step.
            out_specs=pl.BlockSpec((tile_b, NCLS), lambda i, j: (i, 0)),
            scratch_shapes=[pltpu.VMEM((tile_b, C), jnp.float32)],
        ),
        compiler_params=pltpu.CompilerParams(
            dimension_semantics=("parallel", "arbitrary"),
            vmem_limit_bytes=vmem_limit,
        ),
        cost_estimate=cost,
    )(x_flat, w_t, b_p)
    return out[:B, :n_class]


def _reference(x, weight, bias):
    pooled = x.reshape(x.shape[0], x.shape[1], -1).mean(axis=-1)
    return pooled @ weight.T + bias


if __name__ == "__main__":
    # Small shapes consistent with the module: batch=2, len_feature(channels)=32,
    # spatial=16x16, n_class=10.
    B, C, H, W = 2, 32, 16, 16
    n_class = 10

    key = jax.random.PRNGKey(0)
    kx, kw, kb = jax.random.split(key, 3)
    x = jax.random.normal(kx, (B, C, H, W), dtype=jnp.float32)
    # Deterministic parameter init (mimics nn.Linear's uniform(-1/sqrt(C), 1/sqrt(C)))
    bound = 1.0 / jnp.sqrt(jnp.float32(C))
    weight = jax.random.uniform(kw, (n_class, C), minval=-bound, maxval=bound,
                                dtype=jnp.float32)
    bias = jax.random.uniform(kb, (n_class,), minval=-bound, maxval=bound,
                              dtype=jnp.float32)

    out = resnet_classifier_forward(x, weight, bias)
    out = jax.block_until_ready(out)

    ref = _reference(x, weight, bias)
    assert out.shape == (B, n_class)
    assert jnp.allclose(out, ref, atol=1e-5, rtol=1e-5)
    print("KERNEL_OK")
</pallas_src>

<mosaic_0001>
module attributes {stable_mosaic.version = 11 : i64} {
  func.func @_gap_linear_kernel(%arg0: i32, %arg1: i32, %arg2: memref<2x32x128xf32, #tpu.memory_space<vmem>>, %arg3: memref<32x128xf32, #tpu.memory_space<vmem>>, %arg4: memref<1x128xf32, #tpu.memory_space<vmem>>, %arg5: memref<2x128xf32, #tpu.memory_space<vmem>>, %arg6: memref<2x32xf32, #tpu.memory_space<vmem>>) attributes {dimension_semantics = [#tpu.dimension_semantics<parallel>, #tpu.dimension_semantics<arbitrary>], iteration_bounds = array<i64: 1, 2>, scalar_prefetch = 0 : i64, scratch_operands = 1 : i64, tpu.core_type = #tpu.core_type<tc>, window_params = [{transform_indices = @transform_0, window_bounds = array<i64: 2, 32, 128>}, {pipeline_mode = #tpu.pipeline_mode<synchronous>, transform_indices = @transform_1, window_bounds = array<i64: 32, 128>}, {pipeline_mode = #tpu.pipeline_mode<synchronous>, transform_indices = @transform_2, window_bounds = array<i64: 1, 128>}, {transform_indices = @transform_3, window_bounds = array<i64: 2, 128>}]} {
    %c0_i32 = arith.constant 0 : i32
    %0 = arith.cmpi eq, %arg1, %c0_i32 : i32
    %1 = arith.extui %0 : i1 to i32
    %c0_i32_0 = arith.constant 0 : i32
    %2 = arith.cmpi ne, %1, %c0_i32_0 : i32
    scf.if %2 {
      %cst_8 = arith.constant 0.000000e+00 : f32
      %11 = vector.broadcast %cst_8 : f32 to vector<2x32xf32>
      %c0_9 = arith.constant 0 : index
      %c0_10 = arith.constant 0 : index
      %12 = vector.load %arg6[%c0_9, %c0_10] : memref<2x32xf32, #tpu.memory_space<vmem>>, vector<2x32xf32>
      tpu.vector_store %arg6[%c0_9, %c0_10], %11 {strides = array<i32>} : memref<2x32xf32, #tpu.memory_space<vmem>>, vector<2x32xf32>,
    } else {
    }
    %c0 = arith.constant 0 : index
    %c0_1 = arith.constant 0 : index
    %3 = vector.load %arg6[%c0, %c0_1] : memref<2x32xf32, #tpu.memory_space<vmem>>, vector<2x32xf32>
    %c0_2 = arith.constant 0 : index
    %c0_3 = arith.constant 0 : index
    %c0_4 = arith.constant 0 : index
    %4 = vector.load %arg2[%c0_2, %c0_3, %c0_4] : memref<2x32x128xf32, #tpu.memory_space<vmem>>, vector<2x32x128xf32>
    %cst = arith.constant dense<0.000000e+00> : vector<2x32xf32>
    %5 = vector.multi_reduction <add>, %4, %cst [2] : vector<2x32x128xf32> to vector<2x32xf32>
    %6 = arith.addf %3, %5 : vector<2x32xf32>
    %c0_5 = arith.constant 0 : index
    %c0_6 = arith.constant 0 : index
    %7 = vector.load %arg6[%c0_5, %c0_6] : memref<2x32xf32, #tpu.memory_space<vmem>>, vector<2x32xf32>
    tpu.vector_store %arg6[%c0_5, %c0_6], %6 {strides = array<i32>} : memref<2x32xf32, #tpu.memory_space<vmem>>, vector<2x32xf32>,
    %c1_i32 = arith.constant 1 : i32
    %8 = arith.cmpi eq, %arg1, %c1_i32 : i32
    %9 = arith.extui %8 : i1 to i32
    %c0_i32_7 = arith.constant 0 : i32
    %10 = arith.cmpi ne, %9, %c0_i32_7 : i32
    scf.if %10 {
      %c0_8 = arith.constant 0 : index
      %c0_9 = arith.constant 0 : index
      %11 = vector.load %arg6[%c0_8, %c0_9] : memref<2x32xf32, #tpu.memory_space<vmem>>, vector<2x32xf32>
      %cst_10 = arith.constant 3.906250e-03 : f32
      %12 = vector.broadcast %cst_10 : f32 to vector<2x32xf32>
      %13 = arith.mulf %11, %12 : vector<2x32xf32>
      %c0_11 = arith.constant 0 : index
      %c0_12 = arith.constant 0 : index
      %14 = vector.load %arg3[%c0_11, %c0_12] : memref<32x128xf32, #tpu.memory_space<vmem>>, vector<32x128xf32>
      %cst_13 = arith.constant dense<0.000000e+00> : vector<2x128xf32>
      %15 = tpu.matmul %13, %14, %cst_13 {dimension_numbers = #tpu.dot_dimension_numbers<[1], [0], [0], [1], [0, 0, 1, 1], [], []>} : vector<2x32xf32>, vector<32x128xf32>, vector<2x128xf32> -> vector<2x128xf32>
      %c0_14 = arith.constant 0 : index
      %c0_15 = arith.constant 0 : index
      %16 = vector.load %arg4[%c0_14, %c0_15] : memref<1x128xf32, #tpu.memory_space<vmem>>, vector<1x128xf32>
      %17 = vector.broadcast %16 : vector<1x128xf32> to vector<2x128xf32>
      %18 = arith.addf %15, %17 : vector<2x128xf32>
      %c0_16 = arith.constant 0 : index
      %c0_17 = arith.constant 0 : index
      %19 = vector.load %arg5[%c0_16, %c0_17] : memref<2x128xf32, #tpu.memory_space<vmem>>, vector<2x128xf32>
      tpu.vector_store %arg5[%c0_16, %c0_17], %18 {strides = array<i32>} : memref<2x128xf32, #tpu.memory_space<vmem>>, vector<2x128xf32>,
    } else {
    }
    return
  }
  func.func @transform_0(%arg0: i32, %arg1: i32) -> (i32, i32, i32) {
    %c0_i32 = arith.constant 0 : i32
    %c0_i32_0 = arith.constant 0 : i32
    return %arg0, %c0_i32, %arg1 : i32, i32, i32
  }
  func.func @transform_1(%arg0: i32, %arg1: i32) -> (i32, i32) {
    %c0_i32 = arith.constant 0 : i32
    %c0_i32_0 = arith.constant 0 : i32
    %c0_i32_1 = arith.constant 0 : i32
    return %c0_i32, %c0_i32_0 : i32, i32
  }
  func.func @transform_2(%arg0: i32, %arg1: i32) -> (i32, i32) {
    %c0_i32 = arith.constant 0 : i32
    %c0_i32_0 = arith.constant 0 : i32
    %c0_i32_1 = arith.constant 0 : i32
    return %c0_i32, %c0_i32_0 : i32, i32
  }
  func.func @transform_3(%arg0: i32, %arg1: i32) -> (i32, i32) {
    %c0_i32 = arith.constant 0 : i32
    %c0_i32_0 = arith.constant 0 : i32
    return %arg0, %c0_i32 : i32, i32
  }
}

</mosaic_0001>

<bundles_post_ra>
// kernel: tpu_custom_call.1
= control target key start
LH: loop header
LB: loop body
LE: loop exit
PB: predicated region body
PF: predicated region fallthrough
CT: control target
= control target key end

     0   :  { %8 = vsyncpa [#allocation4], 0  ;;  %s903_s0 = inlined_call_operand.hbm [shape: f32[2,32,256], index: 0, kind: input, shape index: {}]   ;;  %s904_s1 = inlined_call_operand.hbm [shape: f32[32,128], index: 1, kind: input, shape index: {}]   ;;  %s905_s2 = inlined_call_operand.vmem [shape: f32[1,128], index: 2, kind: input, shape index: {}]   ;;  %s906_s3 = inlined_call_operand.hbm [shape: f32[2,128], index: 3, kind: output, shape index: {}]  }
   0x1   :  { %10 = vsyncpa [#allocation4 + $0x1], 0 }
   0x2   :  { %11 = vsyncpa [#allocation7], 0 }
   0x3   :  { %12 = vsyncpa [#allocation5], 0  ;;  %s758_s12 = smov 0   ;;  %s760_s13 = smov 0  }
   0x4   :  { %s762_s14 = smov 0   ;;  %s764_s15 = smov 0  }
   0x5   :  { %s766_s16 = smov 0   ;;  %s768_s17 = smov 0  }
   0x6 LB: > { %s908_s18 = sadd.s32 4294967295, %s727_s17   ;;  %p46_p0 = scmp.ne.s32.totalorder %s715_s14, %s711_s13  ;;  %s727_s17 = sphi %s768_s17, %s18_s17   ;;  %s723_s16 = sphi %s766_s16, %s921_s16   ;;  %s719_s15 = sphi %s764_s15, %s920_s15   ;;  %s715_s14 = sphi %s762_s14, %s919_s14   ;;  %s711_s13 = sphi %s760_s13, %s918_s13   ;;  %s707_s12 = sphi %s758_s12, %s917_s12  }
   0x7   : > { %p47_p1 = scmp.eq.s32.totalorder %s727_s17, 0  ;;  %p52_p2 = scmp.ne.s32.totalorder %s711_s13, %s707_s12 }
   0x8   : > { %p793_p3 = scmp.eq.s32.totalorder %s908_s18, 0  ;;  %p480_p4 = scmp.ge.s32.totalorder %s727_s17, 1 }
   0x9   : > { %p48_p5 = por %p47_p1, %p46_p0  ;;  %p131_p6 = scmp.lt.s32.totalorder %s727_s17, 3 }
   0xa   : > { %p801_p7 = por %p793_p3, %p52_p2  ;;  %s729_s22 = smov [#allocation6]  }
   0xb   : > { %p805_p8 = pnand %p480_p4, %p131_p6  ;;  %s143_s23 = sshll.u32 %s729_s22, 4  ;;  %s144_s23 = int_to_ptr.vmem [resolvable:$true] %s143_s23 }
   0xc   : > { %s910_s20 = scalar_select %p801_p7, 1, 0 }
   0xd   : > { %p522_p9 = pneg %p805_p8  ;;  %p531_p11 = scmp.lt.s32.totalorder %s727_s17, 2 }
   0xe   : > { %s39_s25 = sadd.s32 1, %s715_s14  ;;  %s602_s27 = scalar_lea.vmem %s144_s23, 512 }
   0xf   : > { %p813_p10 = pnand %p522_p9, %p793_p3  ;;  %p819_p12 = pnand %p531_p11, %p48_p5 }
  0x10   : > { %p603_p0 = scmp.ne.s32.totalorder %s144_s23, %s602_s27  ;;  %p610_p4 = scmp.lt.s32.totalorder %s144_s23, %s144_s23 }
  0x11   : > { %p593_p13 = pneg %p813_p10  ;;  %p611_p6 = scmp.lt.s32.totalorder %s602_s27, %s602_s27 }
  0x13   : > { %p605_p1 = pnand %p603_p0, %p593_p13  ;;  %p612_p7 = por %p611_p6, %p610_p4 }
  0x15   : > { %p606_p2 = pneg %p605_p1 }
  0x17   : > { %p613_p9 = pnand %p612_p7, %p606_p2 }
  0x19   : > { %616 = shalt.err (!%p613_p9)
}
  0x1a   : > { %s730_s28 = smov 128   ;;  %s731_s29 = smov 8  }
  0x1b   : > { %525 = dma.hbm_to_vmem [thread:$0]  (!%p813_p10), %s904_s1, 512, %s144_s23, [#allocation7], %s730_s28, %s730_s28, %s731_s29  }
  0x1c   : > { %s27_s5 = sadd.s32 1, %s723_s16  ;;  %s160_s6 = sand.u32 1, %s715_s14  }
  0x1d   : > { %p28_p5 = scmp.ge.s32.totalorder %s27_s5, 2  ;;  %s483_s7 = sshll.u32 %s160_s6, 6 }
  0x1e   : > { %s484_s8 = sshll.u32 %s723_s16, 7  ;;  %s164_s22 = scalar_lea.vmem [#allocation3], %s483_s7 }
  0x1f   : > { %s923_s5 = smov (%p28_p5, %s27_s5), 0  ;;  %s172_s11 = scalar_lea.hbm %s903_s0, %s484_s8 }
  0x20   : > { %s35_s12 = ssub.s32 %s723_s16, %s923_s5  ;;  %s173_s24 = sshll.u32 %s164_s22, 4  ;;  %s174_s24 = int_to_ptr.vmem [resolvable:$true] %s173_s24 }
  0x21   : > { %p37_p7 = scmp.eq.s32.totalorder %s35_s12, 0  ;;  %s161_s23 = scalar_lea.sflag [#allocation4], %s160_s6 }
  0x22   : > { %p619_p10 = pneg %p819_p12  ;;  %s630_s30 = scalar_lea.vmem %s174_s24, 1024 }
  0x23   : > { %s844_s27 = scalar_select %p37_p7, %s715_s14, %s39_s25  }
  0x24   : > { %p631_p11 = scmp.ne.s32.totalorder %s174_s24, %s630_s30  ;;  %s732_s4 = smov [#allocation3]  }
  0x25   : > { %s635_s18 = sshll.u32 %s732_s4, 4  ;;  %s636_s18 = int_to_ptr.vmem [resolvable:$false] %s635_s18 }
  0x26   : > { %p633_p13 = pnand %p631_p11, %p619_p10  ;;  %s637_s9 = scalar_lea.vmem %s636_s18, 2048 }
  0x27   : > { %p638_p1 = scmp.lt.s32.totalorder %s174_s24, %s636_s18  ;;  %p639_p2 = scmp.lt.s32.totalorder %s637_s9, %s630_s30 }
  0x28   : > { %p634_p0 = pneg %p633_p13 }
  0x29   : > { %p640_p4 = por %p639_p2, %p638_p1 }
  0x2b   : > { %p641_p6 = pnand %p640_p4, %p634_p0 }
  0x2d   : > { %644 = shalt.err (!%p641_p6)
}
  0x2e   : > { %s733_s7 = smov 256   ;;  %185 = sbr.rel (%p805_p8) target bundleno = 442 (0x1ba), region = 32 }
  0x2f   : > { %529 = dma.hbm_to_vmem [thread:$0]  (!%p819_p12), %s172_s11, 1024, %s174_s24, %s161_s23, %s733_s7, %s730_s28, %s731_s29  }
  0x30   : > { %s187_s25 = sand.u32 (!%p805_p8), 1, %s711_s13   ;;  %p914_p9 = scmp.ne.s32.totalorder (!%p805_p8), %s910_s20, 0 }
  0x31   : > { %s486_s6 = sshll.u32 (!%p805_p8), %s187_s25, 6  ;;  %s188_s8 = scalar_lea.sflag (!%p805_p8), [#allocation4], %s187_s25 }
  0x32   : > { %s191_s10 = scalar_lea.vmem (!%p805_p8), [#allocation3], %s486_s6 }
  0x33   : > { %694 = dma.done.wait (%p914_p9), %s188_s8, 1024  }
  0x34   : > { %696 = vsyncadd (%p914_p9), %s188_s8, 4294966272 }
  0x35   : > { %698 = dma.done.wait (%p793_p3), [#allocation7], 512  }
  0x36   : > { %700 = vsyncadd (%p793_p3), [#allocation7], 4294966784  ;;  %p488_p12 = scmp.ne.s32.totalorder %s719_s15, 0 }
  0x38   : > { %217 = sbr.rel (%p488_p12) target bundleno = 63 (0x3f), region = 44 }
  0x3d   : > { %vm218_vm0 = vcmask 254976   ;;  %v734_v0 = vmov 0.0  }
  0x3e   : > { %219 = vst.msk [vmem:[#allocation2] sm:$0x3] %vm218_vm0, %v734_v0 }
  0x3f PF: > { %v225_v1 = vld [vmem:[%s191_s10 + $0x20] sm:$0xff]  ;;  %v226_v3 = vld [vmem:[%s191_s10 + $0x28] sm:$0xff]  ;;  %v227_v5 = vld [vmem:[%s191_s10 + $0x30] sm:$0xff]  ;;  %v253_v9 = vlaneseq  ;;  %vm264_vm1 = vcmask 130112   ;;  %vm271_vm2 = vcmask 195712   ;;  %vm278_vm3 = vcmask 261312  }
  0x40   : > { %v221_v2 = vld [vmem:[%s191_s10] sm:$0xff]  ;;  %237 = vadd.xlane.f32.xlu1 %v225_v1  ;;  %v222_v4 = vld [vmem:[%s191_s10 + $0x8] sm:$0xff]  ;;  %v223_v6 = vld [vmem:[%s191_s10 + $0x10] sm:$0xff]  ;;  %vm299_vm4 = vcmask 1041409   ;;  %vm303_vm5 = vcmask 254976   ;;  %p489_p3 = scmp.ne.s32.totalorder %s719_s15, 1 }
  0x41   : > { %229 = vadd.xlane.f32.xlu0 %v221_v2  ;;  %v228_v7 = vld [vmem:[%s191_s10 + $0x38] sm:$0xff]  ;;  %v254_v10 = vand.u32 127, %v253_v9  ;;  %v256_v15 = vshrl.u32 %v253_v9, 7 }
  0x42   : > { %v224_v8 = vld [vmem:[%s191_s10 + $0x18] sm:$0xff] }
  0x43   : > { %v259_v13 = vadd.s32 4294967288, %v254_v10  ;;  %v266_v14 = vadd.s32 4294967280, %v254_v10  ;;  %v273_v19 = vadd.s32 4294967272, %v254_v10  ;;  %v257_v21 = vsub.s32 %v254_v10, %v256_v15 }
  0x44   : > { %239 = vadd.xlane.f32.xlu1 %v226_v3 }
  0x45   : > { %231 = vadd.xlane.f32.xlu0 %v222_v4  ;;  %v262_v18 = vsub.s32 %v259_v13, %v256_v15  ;;  %v269_v20 = vsub.s32 %v266_v14, %v256_v15  ;;  %v276_v26 = vsub.s32 %v273_v19, %v256_v15  ;;  %v220_v39 = vld [vmem:[#allocation2] sm:$0x3] }
  0x48   : > { %241 = vadd.xlane.f32.xlu1 %v227_v5 }
  0x49   : > { %233 = vadd.xlane.f32.xlu0 %v223_v6 }
  0x4c   : > { %243 = vadd.xlane.f32.xlu1 %v228_v7 }
  0x4d   : > { %235 = vadd.xlane.f32.xlu0 %v224_v8 }
  0xc9   : > { %v238_v11 = vpop.xlane.xlu1 %237 }
  0xca   : > { %v230_v12 = vpop.xlane.xlu0 %229  ;;  %v283_v29 = vrot.slane %v238_v11, %v257_v21 }
  0xcb   : > { %v258_v30 = vrot.slane %v230_v12, %v257_v21 }
  0xcd   : > { %v240_v16 = vpop.xlane.xlu1 %239 }
  0xce   : > { %v232_v17 = vpop.xlane.xlu0 %231  ;;  %v287_v24 = vrot.slane %v240_v16, %v262_v18 }
  0xcf   : > { %v263_v25 = vrot.slane %v232_v17, %v262_v18 }
  0xd0   : > { %v288_v33 = vsel %vm264_vm1, %v287_v24, %v283_v29 }
  0xd1   : > { %v242_v22 = vpop.xlane.xlu1 %241  ;;  %v265_v34 = vsel %vm264_vm1, %v263_v25, %v258_v30 }
  0xd2   : > { %v234_v23 = vpop.xlane.xlu0 %233  ;;  %v292_v27 = vrot.slane %v242_v22, %v269_v20 }
  0xd3   : > { %v270_v28 = vrot.slane %v234_v23, %v269_v20 }
  0xd4   : > { %v293_v37 = vsel %vm271_vm2, %v292_v27, %v288_v33 }
  0xd5   : > { %v244_v31 = vpop.xlane.xlu1 %243  ;;  %v272_v38 = vsel %vm271_vm2, %v270_v28, %v265_v34 }
  0xd6   : > { %v236_v32 = vpop.xlane.xlu0 %235  ;;  %v297_v35 = vrot.slane %v244_v31, %v276_v26 }
  0xd7   : > { %v277_v36 = vrot.slane %v236_v32, %v276_v26 }
  0xd8   : > { %v298_v40 = vsel %vm278_vm3, %v297_v35, %v293_v37 }
  0xd9   : > { %v279_v41 = vsel %vm278_vm3, %v277_v36, %v272_v38  ;;  %308 = sbr.rel (%p489_p3) target bundleno = 427 (0x1ab), region = 48 }
  0xda   : > { %v300_v42 = vsel %vm299_vm4, %v298_v40, %v279_v41 }
  0xdb   : > { %v302_v43 = vadd.f32 %v300_v42, %v220_v39 }
  0xdd   : > { %304 = vst.msk [vmem:[#allocation2] sm:$0x3] %vm303_vm5, %v302_v43 }
  0xde   : > { %v314_v44 = vld [vmem:[#allocation6 + $0x18] sm:$0xff]  ;;  %v735_v45 = vmov 0.0   ;;  %v313_v46 = vld [vmem:[#allocation6 + $0x10] sm:$0xff]  ;;  %vm736_vm6 = vmmov 0   ;;  %v312_v48 = vld [vmem:[#allocation6 + $0x8] sm:$0xff]  ;;  %vm322_vm7 = vcmask 261120  }
  0xdf   : > { %501 = vmatprep.subr.mxu0 %v735_v45  ;;  %509 = vmatprep.mubr.msk.f32.mxu0 %vm736_vm6, %v735_v45  ;;  %v311_v49 = vld [vmem:[#allocation6] sm:$0xff]  ;;  %v490_v51 = vld [vmem:[%s905_s2] ss:$0 sm:$0xff] }
  0xe0   : > { %502 = vmatpush3.msra.mxu0 %v314_v44 }
  0xe1   : > { %503 = vmatprep.subr.mxu0 %v735_v45 }
  0xe2   : > { %504 = vmatpush3.msra.mxu0 %v313_v46 }
  0xe3   : > { %505 = vmatprep.subr.mxu0 %v735_v45 }
  0xe4   : > { %v309_v47 = vld [vmem:[#allocation2] sm:$0x3]  ;;  %506 = vmatpush3.msra.mxu0 %v312_v48 }
  0xe5   : > { %v310_v50 = vmul.f32 0.00390625, %v309_v47  ;;  %507 = vmatprep.subr.mxu0 %v735_v45 }
  0xe6   : > { %508 = vmatpush3.msra.mxu0 %v311_v49 }
  0xe7   : > { %510 = vmatmul.mubr.msk.f32.vlgmr.msra.gmra.mxu0 %vm322_vm7, %v310_v50 }
 0x1a7   : > { %v392_v52 = vpop.f32.mrf.mxu0 }
 0x1a8   : > { %v393_v53 = vadd.f32 %v490_v51, %v392_v52 }
 0x1a9   : > { %v511_v54 = vpop.f32.mrf.mxu0 }
 0x1aa   : > { %396 = vst [vmem:[#allocation8] sm:$0x3] %v393_v53 }
 0x1ab PF: > { %s915_s19 = sadd.s32 4294967295, %s727_s17   ;;  %s737_s21 = smov [#allocation8]  }
 0x1ac   : > { %p870_p8 = scmp.eq.s32.totalorder %s915_s19, 1  ;;  %s406_s26 = sshll.u32 %s737_s21, 4  ;;  %s407_s26 = int_to_ptr.vmem [resolvable:$true] %s406_s26 }
 0x1ad   : > { %s645_s28 = scalar_lea.vmem %s407_s26, 32  ;;  %p652_p11 = scmp.lt.s32.totalorder %s407_s26, %s407_s26 }
 0x1ae   : > { %p646_p5 = scmp.ne.s32.totalorder %s407_s26, %s645_s28  ;;  %p653_p13 = scmp.lt.s32.totalorder %s645_s28, %s645_s28 }
 0x1b0   : > { %p647_p7 = pnand %p646_p5, %p870_p8  ;;  %p654_p0 = por %p653_p13, %p652_p11 }
 0x1b2   : > { %p648_p10 = pneg %p647_p7 }
 0x1b4   : > { %p655_p1 = pnand %p654_p0, %p648_p10 }
 0x1b6   : > { %658 = shalt.err (!%p655_p1)
}
 0x1b7   : > { %519 = dma.vmem_to_hbm [thread:$0]  (%p870_p8), %s407_s26, 32, %s906_s3, [#allocation5]  }
 0x1b8   : > { %702 = dma.done.wait (%p870_p8), [#allocation5], 32  }
 0x1b9   : > { %704 = vsyncadd (%p870_p8), [#allocation5], 4294967264 }
 0x1ba PF: > { %s18_s17 = sadd.s32 1, %s727_s17   ;;  %s917_s12 = smov %s711_s13 }
 0x1bb   : > { %p15_p2 = scmp.ge.s32.totalorder %s18_s17, 4   ;;  %s918_s13 = smov %s715_s14 }
 0x1bc   : > { %s919_s14 = smov %s844_s27  ;;  %s920_s15 = smov %s723_s16 }
 0x1bd   : > { %s921_s16 = smov %s923_s5  ;;  %17 = sbr.rel (!%p15_p2) target bundleno = 6 (0x6), region = 82 }
 0x1c2   :  { %419 = vsyncpa [#allocation4], 1 }
 0x1c3   :  { %421 = vsyncpa [#allocation4 + $0x1], 1 }
 0x1c4   :  { %422 = vsyncpa [#allocation7], 1 }
 0x1c5   :  { %423 = vsyncpa [#allocation5], 1 }
 0x1c6   :  { %425 = vsyncpa [#allocation5 + $0x1], 1 }

</bundles_post_ra>
